<compile_context>
chip_gen: v6e
topology: v6e:2x2x1
jax: 0.10.0
libtpu: 0.0.40
codegen_flags: <defaults>
</compile_context>

<pallas_src>
import functools

import jax
import jax.numpy as jnp
from jax.experimental import pallas as pl
from jax.experimental.pallas import tpu as pltpu


def _round_up(n: int, m: int) -> int:
    return ((n + m - 1) // m) * m


def _build_pe(num_hiddens: int, max_len: int = 512, dtype=jnp.float32,
              batch_tile: int = 1):
    """Sinusoidal positional-encoding table.

    Returns a 2-D (max_len, batch_tile * num_hiddens) table: the PyTorch buffer
    with its size-1 batch dim squeezed out and (optionally) pre-tiled across the
    batch so the forward kernel is a pure lane-dense add. Built once at init
    (registered buffer), so the tiling is a one-time cost.
    """
    assert num_hiddens % 2 == 0, "num_hiddens must be even (same as PyTorch module)"
    position = jnp.arange(max_len, dtype=jnp.float32)[:, None]               # (max_len, 1)
    div_term = jnp.exp(
        jnp.arange(0, num_hiddens, 2, dtype=jnp.float32)
        * (-jnp.log(10000.0) / num_hiddens)
    )                                                                        # (H//2,)
    pe = jnp.zeros((max_len, num_hiddens), dtype=jnp.float32)
    pe = pe.at[:, 0::2].set(jnp.sin(position * div_term))
    pe = pe.at[:, 1::2].set(jnp.cos(position * div_term))
    if batch_tile > 1:
        pe = jnp.tile(pe, (1, batch_tile))                                   # (max_len, B*H)
    return pe.astype(dtype)


def _pe_add_kernel(x_ref, pe_ref, o_ref, *, lane_repeat: int):
    # x_ref/o_ref: (tS, B*H) lane-dense tiles; pe_ref: (tS, pe_cols).
    pe = pe_ref[...]
    if lane_repeat > 1:
        # Broadcast pe across the batch inside the lane axis; cheap copy work
        # fully hidden under the HBM-bound DMAs.
        pe = jnp.concatenate([pe] * lane_repeat, axis=-1)
    o_ref[...] = x_ref[...] + pe


def positional_encoding_forward(x: jax.Array, pe: jax.Array,
                                block_rows: int | None = None,
                                donate_x: bool = False) -> jax.Array:
    """x: (seq_len, batch, num_hiddens); pe: (max_len, H) or pre-tiled (max_len, B*H)."""
    S, B, H = x.shape
    max_len, pe_cols = pe.shape
    assert S <= max_len, f"seq_len {S} exceeds pe max_len {max_len}"
    assert pe_cols in (H, B * H), f"pe last dim {pe_cols} must be H or B*H"
    lane_repeat = (B * H) // pe_cols
    if pe.dtype != x.dtype:
        pe = pe.astype(x.dtype)   # prefer building pe in x.dtype at init

    # Lane-dense view: merge (B, H) into the lane axis (free, row-major contiguous).
    x2 = x.reshape(S, B * H)

    itemsize = x.dtype.itemsize
    sub = max(8, 32 // itemsize)          # sublane pack: 8 f32, 16 bf16, 32 int8
    LANE = 128
    # Padded per-seq-row tile bytes (what VMEM actually holds).
    x_row_bytes = _round_up(B * H, LANE) * itemsize
    pe_row_bytes = _round_up(pe_cols, LANE) * itemsize

    if block_rows is None:
        # ~4 MiB x tiles: amortizes the ~0.35us/step overhead on v6e/v7x; the
        # explicit vmem_limit below keeps v5e's 16 MiB default from biting.
        target_tile = 4 * 1024 * 1024
        block_rows = max(sub, target_tile // max(x_row_bytes, 1))
        # Keep >= ~8 grid steps so v7x's two TensorCores both get work and the
        # double-buffer pipeline stays warm on short sequences.
        block_rows = min(block_rows, max(sub, _round_up(-(-S // 8), sub)))
    if S <= sub:
        block_rows = S                     # full-dim block satisfies layout rule
    else:
        block_rows = _round_up(min(block_rows, S), sub)

    def _footprint(br):
        # Double-buffered x + out + pe tiles.
        return 2 * br * (2 * x_row_bytes + pe_row_bytes)

    while _footprint(block_rows) > 40 * 1024 * 1024 and block_rows > sub:
        block_rows = max(sub, _round_up(block_rows // 2, sub))

    vmem_limit = int(min(max(_footprint(block_rows) + 8 * 1024 * 1024,
                             16 * 1024 * 1024), 48 * 1024 * 1024))

    grid = (pl.cdiv(S, block_rows),)
    kernel = functools.partial(_pe_add_kernel, lane_repeat=lane_repeat)

    out2 = pl.pallas_call(
        kernel,
        out_shape=jax.ShapeDtypeStruct((S, B * H), x.dtype),
        grid_spec=pltpu.PrefetchScalarGridSpec(
            num_scalar_prefetch=0,
            grid=grid,
            in_specs=[
                pl.BlockSpec((block_rows, B * H), lambda s: (s, 0)),
                # Full pe buffer passed in; index_map selects only the rows the
                # grid touches (no pe[:S] HBM copy before the pallas_call).
                pl.BlockSpec((block_rows, pe_cols), lambda s: (s, 0)),
            ],
            out_specs=pl.BlockSpec((block_rows, B * H), lambda s: (s, 0)),
        ),
        compiler_params=pltpu.CompilerParams(
            dimension_semantics=("parallel",),
            vmem_limit_bytes=vmem_limit,
        ),
        # Only alias when the caller actually donates x (otherwise XLA inserts a copy).
        input_output_aliases=({0: 0} if donate_x else {}),
    )(x2, pe)

    return out2.reshape(S, B, H)


if __name__ == "__main__":
    # Small shapes consistent with the module: seq=8, batch=2, hidden=32
    seq_len, batch, num_hiddens = 8, 2, 32
    max_len = 512

    key = jax.random.PRNGKey(0)
    x = jax.random.normal(key, (seq_len, batch, num_hiddens), dtype=jnp.float32)

    # H=32 is not 128-lane aligned and B=2 is tiny -> pre-tile pe across the
    # batch at init so the kernel is a pure lane-dense streaming add.
    pe = _build_pe(num_hiddens, max_len=max_len, dtype=jnp.float32, batch_tile=batch)

    out = positional_encoding_forward(x, pe)
    out = jax.block_until_ready(out)

    # Reference check (pure JAX, mirrors the PyTorch forward exactly).
    pe_plain = _build_pe(num_hiddens, max_len=max_len, dtype=jnp.float32)   # (max_len, H)
    ref = x + pe_plain[:seq_len][:, None, :]
    assert out.shape == (seq_len, batch, num_hiddens)
    assert jnp.allclose(out, ref, atol=1e-6), "mismatch vs reference"

    print("KERNEL_OK")
</pallas_src>

<mosaic_0001>
module attributes {stable_mosaic.version = 11 : i64} {
  func.func @_pe_add_kernel(%arg0: i32, %arg1: memref<8x64xf32, #tpu.memory_space<vmem>>, %arg2: memref<8x64xf32, #tpu.memory_space<vmem>>, %arg3: memref<8x64xf32, #tpu.memory_space<vmem>>) attributes {dimension_semantics = [#tpu.dimension_semantics<parallel>], iteration_bounds = array<i64: 1>, scalar_prefetch = 0 : i64, scratch_operands = 0 : i64, tpu.core_type = #tpu.core_type<tc>, window_params = [{transform_indices = @transform_0, window_bounds = array<i64: 8, 64>}, {transform_indices = @transform_1, window_bounds = array<i64: 8, 64>}, {transform_indices = @transform_2, window_bounds = array<i64: 8, 64>}]} {
    %c0 = arith.constant 0 : index
    %c0_0 = arith.constant 0 : index
    %0 = vector.load %arg2[%c0, %c0_0] : memref<8x64xf32, #tpu.memory_space<vmem>>, vector<8x64xf32>
    %c0_1 = arith.constant 0 : index
    %c0_2 = arith.constant 0 : index
    %1 = vector.load %arg1[%c0_1, %c0_2] : memref<8x64xf32, #tpu.memory_space<vmem>>, vector<8x64xf32>
    %2 = arith.addf %1, %0 : vector<8x64xf32>
    %c0_3 = arith.constant 0 : index
    %c0_4 = arith.constant 0 : index
    %3 = vector.load %arg3[%c0_3, %c0_4] : memref<8x64xf32, #tpu.memory_space<vmem>>, vector<8x64xf32>
    tpu.vector_store %arg3[%c0_3, %c0_4], %2 {strides = array<i32>} : memref<8x64xf32, #tpu.memory_space<vmem>>, vector<8x64xf32>,
    return
  }
  func.func @transform_0(%arg0: i32) -> (i32, i32) {
    %c0_i32 = arith.constant 0 : i32
    %c0_i32_0 = arith.constant 0 : i32
    return %arg0, %c0_i32 : i32, i32
  }
  func.func @transform_1(%arg0: i32) -> (i32, i32) {
    %c0_i32 = arith.constant 0 : i32
    %c0_i32_0 = arith.constant 0 : i32
    return %arg0, %c0_i32 : i32, i32
  }
  func.func @transform_2(%arg0: i32) -> (i32, i32) {
    %c0_i32 = arith.constant 0 : i32
    %c0_i32_0 = arith.constant 0 : i32
    return %arg0, %c0_i32 : i32, i32
  }
}

</mosaic_0001>

<bundles_post_ra>
// kernel: tpu_custom_call.1
= control target key start
LH: loop header
LB: loop body
LE: loop exit
PB: predicated region body
PF: predicated region fallthrough
CT: control target
= control target key end

     0   :  { %vm15_vm0 = vcmask 523264   ;;  %s79_s0 = inlined_call_operand.vmem [shape: f32[8,64], index: 0, kind: input, shape index: {}]   ;;  %s80_s1 = inlined_call_operand.vmem [shape: f32[512,64], index: 1, kind: input, shape index: {}]   ;;  %s81_s2 = inlined_call_operand.hbm [shape: f32[8,64], index: 2, kind: output, shape index: {}]  }
   0x1   :  { %v12_v0 = vld [vmem:[%s80_s1] sm:$0xff] }
   0x2   :  { %v13_v1 = vld [vmem:[%s79_s0] sm:$0xff] }
   0x3   :  { %7 = vsyncpa [#allocation3], 0  ;;  %v14_v2 = vadd.f32 %v13_v1, %v12_v0  ;;  %s54_s13 = smov [#allocation2]  }
   0x4   :  { %s23_s14 = sshll.u32 %s54_s13, 4  ;;  %s24_s14 = int_to_ptr.vmem [resolvable:$true] %s23_s14 }
   0x5   :  { %16 = vst.msk [vmem:[#allocation2] sm:$0xff] %vm15_vm0, %v14_v2  ;;  %s32_s15 = scalar_lea.vmem %s24_s14, 128  ;;  %p37_p1 = scmp.lt.s32.totalorder %s24_s14, %s24_s14 }
   0x6   :  { %p33_p0 = scmp.ne.s32.totalorder %s24_s14, %s32_s15  ;;  %p38_p2 = scmp.lt.s32.totalorder %s32_s15, %s32_s15 }
   0x8   :  { %p39_p3 = por %p38_p2, %p37_p1 }
   0xa   :  { %p40_p4 = pnand %p39_p3, %p33_p0 }
   0xc   :  { %43 = shalt.err (!%p40_p4)
}
   0xd   :  { %26 = dma.vmem_to_hbm [thread:$0]  %s24_s14, 128, %s81_s2, [#allocation3]  }
   0xe   :  { %52 = dma.done.wait [#allocation3], 128  }
   0xf   :  { %53 = vsyncadd [#allocation3], 4294967168 }
  0x10   :  { %30 = vsyncpa [#allocation3], 1 }

</bundles_post_ra>
